<compile_context>
chip_gen: v7x
topology: tpu7x:2x2x1
jax: 0.10.0
libtpu: 0.0.40
codegen_flags: <defaults>
</compile_context>

<pallas_src>
import functools

import jax
import jax.numpy as jnp
from jax.experimental import pallas as pl
from jax.experimental.pallas import tpu as pltpu


def _round_up(x, m):
    return (x + m - 1) // m * m


def _vmem_budget():
    """Returns (vmem_limit_bytes, tile_budget_bytes), generation aware."""
    phys = 64 * 1024 * 1024                      # conservative fallback == v7x per-TC VMEM
    try:
        phys = int(pltpu.get_tpu_info().vmem_capacity_bytes)
    except Exception:                            # non-TPU backend / API drift
        pass
    limit = min(phys // 2, 48 * 1024 * 1024)     # ~32 MiB on v7x, 48 MiB on v5e/v6e
    return limit, (3 * limit) // 4               # headroom for weights / internal scratch


# ----------------------------------------------------------------------------
# Kernel 1: Gram-form statistics of the bias-free 1x1x1 conv output.
#   x_ref : (1, C_in, tile_s)
#   g_ref : (1, 1, C_in, C_in)  accumulates  Σ_s x·xᵀ   (per (chunk, batch))
#   sx_ref: (1, 1, C_in, 1)     accumulates  Σ_s x
# ----------------------------------------------------------------------------
def _gram_stats_kernel(x_ref, g_ref, sx_ref, *, s_total, tile_s, n_s, ns_half):
    step = pl.program_id(0) * ns_half + pl.program_id(2)   # nominal spatial block

    @pl.when(pl.program_id(2) == 0)
    def _init():
        g_ref[...] = jnp.zeros_like(g_ref)
        sx_ref[...] = jnp.zeros_like(sx_ref)

    @pl.when(step < n_s)                      # skip the duplicated (clamped) step
    def _acc():
        x = x_ref[0]                          # (c, tile_s) f32
        if s_total % tile_s != 0:
            # Lane-mask the ragged trailing tile; zero columns contribute 0.
            lane = jax.lax.broadcasted_iota(jnp.int32, x.shape, 1)
            x = jnp.where(step * tile_s + lane < s_total, x, 0.0)
        g_ref[0, 0] += jax.lax.dot_general(
            x, x, (((1,), (1,)), ((), ())), preferred_element_type=jnp.float32)
        sx_ref[0, 0] += jnp.sum(x, axis=1, keepdims=True)


# ----------------------------------------------------------------------------
# Kernel 2: fused conv + folded-BatchNorm affine + ReLU:  out = max(W2·x + b2, 0)
# Output written directly in (B, C_out, S) contiguous order (lane-dense).
# ----------------------------------------------------------------------------
def _conv_affine_relu_kernel(x_ref, w2_ref, b2_ref, o_ref):
    y = jnp.dot(w2_ref[...], x_ref[0], preferred_element_type=jnp.float32)
    # TODO(synk): optionally store bf16 here (halves ~80% of HBM traffic) if the
    # consumer of the upsampled latent tolerates it; kept f32 to match the module.
    o_ref[0] = jnp.maximum(y + b2_ref[...], 0.0)


def latent_code_upsample(x, w, bias, gamma, beta, *, upsample_factor=2,
                         channel_reduction=1, eps=1e-5):
    """x: (B, C, D, H, W) float32.  Returns (B, C//cr, D*u, H*u, W*u)."""
    del bias  # a per-channel conv bias cancels exactly through training-mode BN
    b, c, d, h, w_sp = x.shape
    u = upsample_factor
    cr = channel_reduction
    c_out = c * u ** 3 // cr

    s_total = d * h * w_sp
    n = b * s_total                         # BN reduction count (true, unpadded)

    # channels-on-sublane / spatial-on-lane slab: zero-copy reshape of NCDHW
    x3 = x.reshape(b, c, s_total).astype(jnp.float32)
    wm = w.reshape(c_out, c).astype(jnp.float32)

    vmem_limit, tile_budget = _vmem_budget()
    s128 = _round_up(s_total, 128)

    # pass-2 tile: x tile + out tile, double-buffered f32.
    tile_s2 = max(128, min(32768, s128,
                           (tile_budget // (8 * (c + c_out))) // 128 * 128))
    # pass-1 tile: only the x tile streams, so it can be much larger.
    tile_s1 = max(128, min(131072, s128,
                           (tile_budget // (8 * c)) // 128 * 128))
    if b == 1:  # give the second spatial chunk (v7x's 2nd TC) real work
        tile_s1 = min(tile_s1, max(128, _round_up(pl.cdiv(s_total, 2), 128)))

    n_s1 = pl.cdiv(s_total, tile_s1)
    ns_half = pl.cdiv(n_s1, 2)
    n_s2 = pl.cdiv(s_total, tile_s2)

    # ---- pass 1: Gram-form batch statistics (x streaming only) --------------
    stats_kernel = functools.partial(_gram_stats_kernel, s_total=s_total,
                                     tile_s=tile_s1, n_s=n_s1, ns_half=ns_half)
    part_g, part_sx = pl.pallas_call(
        stats_kernel,
        out_shape=(jax.ShapeDtypeStruct((2, b, c, c), jnp.float32),
                   jax.ShapeDtypeStruct((2, b, c, 1), jnp.float32)),
        grid_spec=pltpu.PrefetchScalarGridSpec(
            num_scalar_prefetch=0,
            grid=(2, b, ns_half),
            in_specs=[pl.BlockSpec(
                (1, c, tile_s1),
                lambda pp, bb, ss: (bb, 0,
                                    jnp.minimum(pp * ns_half + ss, n_s1 - 1)))],
            out_specs=[pl.BlockSpec((1, 1, c, c), lambda pp, bb, ss: (pp, bb, 0, 0)),
                       pl.BlockSpec((1, 1, c, 1), lambda pp, bb, ss: (pp, bb, 0, 0))]),
        compiler_params=pltpu.CompilerParams(
            dimension_semantics=("parallel", "parallel", "arbitrary"),
            vmem_limit_bytes=vmem_limit),
    )(x3)

    # ---- glue: recover conv-output stats, fold training-mode BN into conv ----
    g_sum = jnp.sum(part_g, axis=(0, 1))          # (c, c)   = Σ_s x xᵀ
    sx_sum = jnp.sum(part_sx, axis=(0, 1))        # (c, 1)   = Σ_s x
    total_sum = wm @ sx_sum                       # (c_out,1)= Σ_s y
    total_sq = jnp.sum((wm @ g_sum) * wm, axis=1, keepdims=True)  # Σ_s y²
    mean = total_sum / n
    # TODO(synk): E[y²]−E[y]² is cancellation-prone for very large N / |mean|>>std;
    # a shifted/two-pass variance would need another sweep over x.
    var = jnp.maximum(total_sq / n - mean * mean, 0.0)
    scale = gamma.reshape(c_out, 1).astype(jnp.float32) * jax.lax.rsqrt(var + eps)
    shift = beta.reshape(c_out, 1).astype(jnp.float32) - mean * scale
    w2 = scale * wm                               # (C_out, C_in)

    # ---- pass 2: fused conv + BN affine + ReLU (y recomputed from x) ---------
    out3 = pl.pallas_call(
        _conv_affine_relu_kernel,
        out_shape=jax.ShapeDtypeStruct((b, c_out, s_total), jnp.float32),
        grid_spec=pltpu.PrefetchScalarGridSpec(
            num_scalar_prefetch=0,
            grid=(b, n_s2),
            in_specs=[pl.BlockSpec((1, c, tile_s2), lambda bb, ss: (bb, 0, ss)),
                      pl.BlockSpec((c_out, c), lambda bb, ss: (0, 0)),
                      pl.BlockSpec((c_out, 1), lambda bb, ss: (0, 0))],
            out_specs=pl.BlockSpec((1, c_out, tile_s2),
                                   lambda bb, ss: (bb, 0, ss))),
        compiler_params=pltpu.CompilerParams(
            dimension_semantics=("parallel", "parallel"),
            vmem_limit_bytes=vmem_limit),
    )(x3, w2, shift)

    # (B, C_out, D*H*W) contiguous == the buffer PyTorch's .view(...) sees.
    return out3.reshape(b, c // cr, d * u, h * u, w_sp * u)


# ----------------------------------------------------------------------------
# Pure-JAX reference (mirrors the PyTorch forward, bias included).
# ----------------------------------------------------------------------------
def _reference(x, w, bias, gamma, beta, u, cr, eps=1e-5):
    b, c, d, h, w_sp = x.shape
    c_out = c * u ** 3 // cr
    wm = w.reshape(c_out, c)
    y = jnp.einsum('bcdhw,oc->bodhw', x, wm) + bias[None, :, None, None, None]
    mean = y.mean(axis=(0, 2, 3, 4), keepdims=True)
    var = y.var(axis=(0, 2, 3, 4), keepdims=True)  # biased, like BN training
    y = (y - mean) * jax.lax.rsqrt(var + eps)
    y = y * gamma[None, :, None, None, None] + beta[None, :, None, None, None]
    y = jnp.maximum(y, 0.0)
    return y.reshape(b, c // cr, d * u, h * u, w_sp * u)


if __name__ == "__main__":
    key = jax.random.PRNGKey(0)
    kx, kw, kb, kg, kbeta = jax.random.split(key, 5)

    # Small shapes consistent with the module: B=2, C_in=4, D=H=W=8, u=2, cr=1
    B, C, D, H, W = 2, 4, 8, 8, 8
    U, CR = 2, 1
    C_OUT = C * U ** 3 // CR  # 32

    x = jax.random.normal(kx, (B, C, D, H, W), dtype=jnp.float32)
    # Conv3d weight is (C_out, C_in, 1, 1, 1)
    w = 0.1 * jax.random.normal(kw, (C_OUT, C, 1, 1, 1), dtype=jnp.float32)
    bias = 0.1 * jax.random.normal(kb, (C_OUT,), dtype=jnp.float32)
    gamma = 1.0 + 0.1 * jax.random.normal(kg, (C_OUT,), dtype=jnp.float32)
    beta = 0.1 * jax.random.normal(kbeta, (C_OUT,), dtype=jnp.float32)

    fn = jax.jit(functools.partial(latent_code_upsample,
                                   upsample_factor=U, channel_reduction=CR))
    out = fn(x, w, bias, gamma, beta)
    out = jax.block_until_ready(out)

    ref = _reference(x, w, bias, gamma, beta, U, CR)
    assert out.shape == (B, C // CR, D * U, H * U, W * U), out.shape
    assert jnp.allclose(out, ref, atol=1e-4, rtol=1e-4), \
        float(jnp.max(jnp.abs(out - ref)))

    print("KERNEL_OK")
</pallas_src>

<mosaic_0001>
module attributes {stable_mosaic.version = 11 : i64} {
  func.func @_gram_stats_kernel(%arg0: i32, %arg1: i32, %arg2: i32, %arg3: memref<1x4x512xf32, #tpu.memory_space<vmem>>, %arg4: memref<1x1x4x4xf32, #tpu.memory_space<vmem>>, %arg5: memref<1x1x4x1xf32, #tpu.memory_space<vmem>>) attributes {dimension_semantics = [#tpu.dimension_semantics<parallel>, #tpu.dimension_semantics<parallel>, #tpu.dimension_semantics<arbitrary>], iteration_bounds = array<i64: 2, 2, 1>, scalar_prefetch = 0 : i64, scratch_operands = 0 : i64, tpu.core_type = #tpu.core_type<tc>, window_params = [{transform_indices = @transform_0, window_bounds = array<i64: 1, 4, 512>}, {transform_indices = @transform_1, window_bounds = array<i64: 1, 1, 4, 4>}, {transform_indices = @transform_2, window_bounds = array<i64: 1, 1, 4, 1>}]} {
    %c1_i32 = arith.constant 1 : i32
    %0 = arith.muli %arg0, %c1_i32 : i32
    %1 = arith.addi %0, %arg2 : i32
    %c0_i32 = arith.constant 0 : i32
    %2 = arith.cmpi eq, %arg2, %c0_i32 : i32
    %3 = arith.extui %2 : i1 to i32
    %c0_i32_0 = arith.constant 0 : i32
    %4 = arith.cmpi ne, %3, %c0_i32_0 : i32
    scf.if %4 {
      %cst = arith.constant 0.000000e+00 : f32
      %8 = vector.broadcast %cst : f32 to vector<1x1x4x4xf32>
      %c0 = arith.constant 0 : index
      %c0_3 = arith.constant 0 : index
      %c0_4 = arith.constant 0 : index
      %c0_5 = arith.constant 0 : index
      %9 = vector.load %arg4[%c0, %c0_3, %c0_4, %c0_5] : memref<1x1x4x4xf32, #tpu.memory_space<vmem>>, vector<1x1x4x4xf32>
      tpu.vector_store %arg4[%c0, %c0_3, %c0_4, %c0_5], %8 {strides = array<i32>} : memref<1x1x4x4xf32, #tpu.memory_space<vmem>>, vector<1x1x4x4xf32>,
      %cst_6 = arith.constant 0.000000e+00 : f32
      %10 = vector.broadcast %cst_6 : f32 to vector<1x1x4x1xf32>
      %c0_7 = arith.constant 0 : index
      %c0_8 = arith.constant 0 : index
      %c0_9 = arith.constant 0 : index
      %c0_10 = arith.constant 0 : index
      %11 = vector.load %arg5[%c0_7, %c0_8, %c0_9, %c0_10] : memref<1x1x4x1xf32, #tpu.memory_space<vmem>>, vector<1x1x4x1xf32>
      tpu.vector_store %arg5[%c0_7, %c0_8, %c0_9, %c0_10], %10 {strides = array<i32>} : memref<1x1x4x1xf32, #tpu.memory_space<vmem>>, vector<1x1x4x1xf32>,
    } else {
    }
    %c1_i32_1 = arith.constant 1 : i32
    %5 = arith.cmpi slt, %1, %c1_i32_1 : i32
    %6 = arith.extui %5 : i1 to i32
    %c0_i32_2 = arith.constant 0 : i32
    %7 = arith.cmpi ne, %6, %c0_i32_2 : i32
    scf.if %7 {
      %c0 = arith.constant 0 : index
      %c0_3 = arith.constant 0 : index
      %c0_4 = arith.constant 0 : index
      %8 = vector.load %arg3[%c0, %c0_3, %c0_4] : memref<1x4x512xf32, #tpu.memory_space<vmem>>, vector<1x4x512xf32>
      %9 = vector.shape_cast %8 : vector<1x4x512xf32> to vector<4x512xf32>
      %c0_5 = arith.constant 0 : index
      %c0_6 = arith.constant 0 : index
      %c0_7 = arith.constant 0 : index
      %c0_8 = arith.constant 0 : index
      %10 = vector.load %arg4[%c0_5, %c0_6, %c0_7, %c0_8] : memref<1x1x4x4xf32, #tpu.memory_space<vmem>>, vector<1x1x4x4xf32>
      %11 = vector.shape_cast %10 : vector<1x1x4x4xf32> to vector<4x4xf32>
      %cst = arith.constant dense<0.000000e+00> : vector<4x4xf32>
      %12 = tpu.matmul %9, %9, %cst {dimension_numbers = #tpu.dot_dimension_numbers<[1], [1], [0], [0], [0, 0, 1, 0], [], []>} : vector<4x512xf32>, vector<4x512xf32>, vector<4x4xf32> -> vector<4x4xf32>
      %13 = arith.addf %11, %12 : vector<4x4xf32>
      %c0_9 = arith.constant 0 : index
      %c0_10 = arith.constant 0 : index
      %c0_11 = arith.constant 0 : index
      %c0_12 = arith.constant 0 : index
      %14 = vector.load %arg4[%c0_9, %c0_10, %c0_11, %c0_12] : memref<1x1x4x4xf32, #tpu.memory_space<vmem>>, vector<1x1x4x4xf32>
      %15 = vector.shape_cast %14 : vector<1x1x4x4xf32> to vector<4x4xf32>
      %16 = vector.shape_cast %13 : vector<4x4xf32> to vector<1x1x4x4xf32>
      tpu.vector_store %arg4[%c0_9, %c0_10, %c0_11, %c0_12], %16 {strides = array<i32>} : memref<1x1x4x4xf32, #tpu.memory_space<vmem>>, vector<1x1x4x4xf32>,
      %c0_13 = arith.constant 0 : index
      %c0_14 = arith.constant 0 : index
      %c0_15 = arith.constant 0 : index
      %c0_16 = arith.constant 0 : index
      %17 = vector.load %arg5[%c0_13, %c0_14, %c0_15, %c0_16] : memref<1x1x4x1xf32, #tpu.memory_space<vmem>>, vector<1x1x4x1xf32>
      %18 = vector.shape_cast %17 : vector<1x1x4x1xf32> to vector<4x1xf32>
      %cst_17 = arith.constant dense<0.000000e+00> : vector<4xf32>
      %19 = vector.multi_reduction <add>, %9, %cst_17 [1] : vector<4x512xf32> to vector<4xf32>
      %20 = vector.shape_cast %19 : vector<4xf32> to vector<4x1xf32>
      %21 = arith.addf %18, %20 : vector<4x1xf32>
      %c0_18 = arith.constant 0 : index
      %c0_19 = arith.constant 0 : index
      %c0_20 = arith.constant 0 : index
      %c0_21 = arith.constant 0 : index
      %22 = vector.load %arg5[%c0_18, %c0_19, %c0_20, %c0_21] : memref<1x1x4x1xf32, #tpu.memory_space<vmem>>, vector<1x1x4x1xf32>
      %23 = vector.shape_cast %22 : vector<1x1x4x1xf32> to vector<4x1xf32>
      %24 = vector.shape_cast %21 : vector<4x1xf32> to vector<1x1x4x1xf32>
      tpu.vector_store %arg5[%c0_18, %c0_19, %c0_20, %c0_21], %24 {strides = array<i32>} : memref<1x1x4x1xf32, #tpu.memory_space<vmem>>, vector<1x1x4x1xf32>,
    } else {
    }
    return
  }
  func.func @transform_0(%arg0: i32, %arg1: i32, %arg2: i32) -> (i32, i32, i32) {
    %c1_i32 = arith.constant 1 : i32
    %0 = arith.muli %arg0, %c1_i32 : i32
    %1 = arith.addi %0, %arg2 : i32
    %c0_i32 = arith.constant 0 : i32
    %2 = arith.minsi %1, %c0_i32 : i32
    %c0_i32_0 = arith.constant 0 : i32
    %c0_i32_1 = arith.constant 0 : i32
    return %arg1, %c0_i32_0, %2 : i32, i32, i32
  }
  func.func @transform_1(%arg0: i32, %arg1: i32, %arg2: i32) -> (i32, i32, i32, i32) {
    %c0_i32 = arith.constant 0 : i32
    %c0_i32_0 = arith.constant 0 : i32
    %c0_i32_1 = arith.constant 0 : i32
    return %arg0, %arg1, %c0_i32, %c0_i32_0 : i32, i32, i32, i32
  }
  func.func @transform_2(%arg0: i32, %arg1: i32, %arg2: i32) -> (i32, i32, i32, i32) {
    %c0_i32 = arith.constant 0 : i32
    %c0_i32_0 = arith.constant 0 : i32
    %c0_i32_1 = arith.constant 0 : i32
    return %arg0, %arg1, %c0_i32, %c0_i32_0 : i32, i32, i32, i32
  }
}

module attributes {stable_mosaic.version = 11 : i64} {
  func.func @_conv_affine_relu_kernel(%arg0: i32, %arg1: i32, %arg2: memref<1x4x512xf32, #tpu.memory_space<vmem>>, %arg3: memref<32x4xf32, #tpu.memory_space<vmem>>, %arg4: memref<32x1xf32, #tpu.memory_space<vmem>>, %arg5: memref<1x32x512xf32, #tpu.memory_space<vmem>>) attributes {dimension_semantics = [#tpu.dimension_semantics<parallel>, #tpu.dimension_semantics<parallel>], iteration_bounds = array<i64: 2, 1>, scalar_prefetch = 0 : i64, scratch_operands = 0 : i64, tpu.core_type = #tpu.core_type<tc>, window_params = [{transform_indices = @transform_0, window_bounds = array<i64: 1, 4, 512>}, {pipeline_mode = #tpu.pipeline_mode<synchronous>, transform_indices = @transform_1, window_bounds = array<i64: 32, 4>}, {pipeline_mode = #tpu.pipeline_mode<synchronous>, transform_indices = @transform_2, window_bounds = array<i64: 32, 1>}, {transform_indices = @transform_3, window_bounds = array<i64: 1, 32, 512>}]} {
    %c0 = arith.constant 0 : index
    %c0_0 = arith.constant 0 : index
    %0 = vector.load %arg3[%c0, %c0_0] : memref<32x4xf32, #tpu.memory_space<vmem>>, vector<32x4xf32>
    %c0_1 = arith.constant 0 : index
    %c0_2 = arith.constant 0 : index
    %c0_3 = arith.constant 0 : index
    %1 = vector.load %arg2[%c0_1, %c0_2, %c0_3] : memref<1x4x512xf32, #tpu.memory_space<vmem>>, vector<1x4x512xf32>
    %2 = vector.shape_cast %1 : vector<1x4x512xf32> to vector<4x512xf32>
    %cst = arith.constant dense<0.000000e+00> : vector<32x512xf32>
    %3 = tpu.matmul %0, %2, %cst {dimension_numbers = #tpu.dot_dimension_numbers<[1], [0], [0], [1], [0, 0, 1, 1], [], []>} : vector<32x4xf32>, vector<4x512xf32>, vector<32x512xf32> -> vector<32x512xf32>
    %c0_4 = arith.constant 0 : index
    %c0_5 = arith.constant 0 : index
    %4 = vector.load %arg4[%c0_4, %c0_5] : memref<32x1xf32, #tpu.memory_space<vmem>>, vector<32x1xf32>
    %5 = vector.broadcast %4 : vector<32x1xf32> to vector<32x512xf32>
    %6 = arith.addf %3, %5 : vector<32x512xf32>
    %cst_6 = arith.constant 0.000000e+00 : f32
    %7 = vector.broadcast %cst_6 : f32 to vector<32x512xf32>
    %8 = arith.maximumf %6, %7 : vector<32x512xf32>
    %c0_7 = arith.constant 0 : index
    %c0_8 = arith.constant 0 : index
    %c0_9 = arith.constant 0 : index
    %9 = vector.load %arg5[%c0_7, %c0_8, %c0_9] : memref<1x32x512xf32, #tpu.memory_space<vmem>>, vector<1x32x512xf32>
    %10 = vector.shape_cast %9 : vector<1x32x512xf32> to vector<32x512xf32>
    %11 = vector.shape_cast %8 : vector<32x512xf32> to vector<1x32x512xf32>
    tpu.vector_store %arg5[%c0_7, %c0_8, %c0_9], %11 {strides = array<i32>} : memref<1x32x512xf32, #tpu.memory_space<vmem>>, vector<1x32x512xf32>,
    return
  }
  func.func @transform_0(%arg0: i32, %arg1: i32) -> (i32, i32, i32) {
    %c0_i32 = arith.constant 0 : i32
    %c0_i32_0 = arith.constant 0 : i32
    return %arg0, %c0_i32, %arg1 : i32, i32, i32
  }
  func.func @transform_1(%arg0: i32, %arg1: i32) -> (i32, i32) {
    %c0_i32 = arith.constant 0 : i32
    %c0_i32_0 = arith.constant 0 : i32
    %c0_i32_1 = arith.constant 0 : i32
    return %c0_i32, %c0_i32_0 : i32, i32
  }
  func.func @transform_2(%arg0: i32, %arg1: i32) -> (i32, i32) {
    %c0_i32 = arith.constant 0 : i32
    %c0_i32_0 = arith.constant 0 : i32
    %c0_i32_1 = arith.constant 0 : i32
    return %c0_i32, %c0_i32_0 : i32, i32
  }
  func.func @transform_3(%arg0: i32, %arg1: i32) -> (i32, i32, i32) {
    %c0_i32 = arith.constant 0 : i32
    %c0_i32_0 = arith.constant 0 : i32
    return %arg0, %c0_i32, %arg1 : i32, i32, i32
  }
}

</mosaic_0001>

<bundles_post_ra>
// kernel: latent_code_upsample.2
= control target key start
LH: loop header
LB: loop body
LE: loop exit
PB: predicated region body
PF: predicated region fallthrough
CT: control target
= control target key end

     0   :  { %s658_s9 = smov 0   ;;  %s660_s10 = smov 0   ;;  %s728_s0 = inlined_call_operand.vmem [shape: f32[2,4,512], index: 0, kind: input, shape index: {}]   ;;  %s729_s1 = inlined_call_operand.vmem [shape: f32[2,2,4,4], index: 1, kind: output, shape index: {0}]   ;;  %s730_s2 = inlined_call_operand.vmem [shape: f32[2,2,4,1], index: 2, kind: output, shape index: {1}]  }
   0x1   :  { %s662_s11 = smov 0   ;;  %s664_s12 = smov 0  }
   0x2   :  { %s666_s13 = smov 0  }
   0x3 LB: > { %s28_s14 = sadd.s32 1, %s632_s11  ;;  %s32_s15 = sadd.s32 1, %s636_s12  ;;  %s640_s13 = sphi %s666_s13, %s13_s13   ;;  %s636_s12 = sphi %s664_s12, %s734_s12   ;;  %s632_s11 = sphi %s662_s11, %s733_s11   ;;  %s628_s10 = sphi %s660_s10, %s732_s10   ;;  %s624_s9 = sphi %s658_s9, %s731_s9  }
   0x4   : > { %p30_p0 = scmp.ge.s32.totalorder %s28_s14, 2  ;;  %p548_p1 = scmp.ge.s32.totalorder %s640_s13, 1 }
   0x5   : > { %p157_p2 = scmp.lt.s32.totalorder %s640_s13, 5 }
   0x6   : > { %s736_s14 = smov (%p30_p0, %s28_s14), 0  ;;  %s738_s15 = smov (!%p30_p0, %s32_s15), %s636_s12 }
   0x7   : > { %p158_p3 = pnand %p548_p1, %p157_p2  ;;  %p34_p4 = scmp.ge.s32.totalorder %s738_s15, 2 }
   0x8   : > { %p198_p5 = scmp.lt.s32.totalorder (!%p158_p3), %s628_s10, 0  ;;  %p201_p6 = scmp.lt.s32.totalorder (!%p158_p3), %s624_s9, 1  ;;  %vm234_vm0 = vcmask (!%p158_p3), 27648   ;;  %vm236_vm1 = vcmask (!%p158_p3), 3072   ;;  %v642_v0 = vmov (!%p158_p3), 0.0  }
   0x9   : > { %s740_s15 = smov (%p34_p4, %s738_s15), 0  ;;  %161 = sbr.rel (%p158_p3) target bundleno = 249 (0xf9), region = 24 }
   0xa   : > { %p213_p7 = scmp.lt.s32.totalorder (!%p158_p3), %s628_s10, 1  ;;  %p556_p9 = scmp.ge.s32.totalorder (!%p158_p3), %s628_s10, 1 }
  0x10   : > { %s199_s16 = scalar_select %p198_p5, %s628_s10, 0 }
  0x11   : > { %s742_s9 = smov (!%p201_p6, %s624_s9), 1  ;;  %vm395_vm2 = vcmask (!%p556_p9), 1043456  }
  0x12   : > { %s549_s17 = sshll.u32 %s199_s16, 2  ;;  %s550_s18 = sshll.u32 %s742_s9, 2 }
  0x13   : > { %p203_p8 = scmp.lt.s32.totalorder %s549_s17, 3 }
  0x14   : > { %s214_s19 = scalar_select %p213_p7, %s628_s10, 1 }
  0x15   : > { %s744_s17 = smov (!%p203_p8, %s549_s17), 3  ;;  %241 = sbr.rel (%p556_p9) target bundleno = 249 (0xf9), region = 32 }
  0x16   : > { %s552_s20 = sshll.u32 %s214_s19, 1  ;;  %s206_s21 = sadd.s32 %s550_s18, %s744_s17 }
  0x17   : > { %s218_s22 = sadd.s32 %s552_s20, %s742_s9  ;;  %s551_s23 = sshll.u32 %s206_s21, 2 }
  0x18   : > { %s553_s24 = sshll.u32 %s218_s22, 2  ;;  %s208_s27 = scalar_lea.vmem %s728_s0, %s551_s23 }
  0x19   : > { %s700_s30 = scalar_lea.vmem %s729_s1, %s553_s24  ;;  %s228_s5 = scalar_lea.vmem %s730_s2, %s553_s24  ;;  %v242_v1 = vld [vmem:[%s208_s27] sm:$0xff] (!%p556_p9)  ;;  %v243_v2 = vld [vmem:[%s208_s27 + $0x8] sm:$0xff] (!%p556_p9) }
  0x1a   : > { %235 = vst.msk [vmem:[%s700_s30] sm:$0xf] %vm234_vm0, %v642_v0  ;;  %v247_v3 = vcombine.high (!%p556_p9), %v242_v1, %v242_v1  ;;  %v248_v4 = vcombine.high (!%p556_p9), %v243_v2, %v243_v2  ;;  %v396_v5 = vsel (!%p556_p9), %vm395_vm2, %v242_v1, 0.0  ;;  %v399_v7 = vsel (!%p556_p9), %vm395_vm2, %v243_v2, 0.0 }
  0x1b   : > { %237 = vst.msk [vmem:[%s228_s5] sm:$0xf] %vm236_vm1, %v642_v0 }
  0x1c   : > { %251 = vmatprep.subr.mxu0 %v247_v3  ;;  %321 = vmatprep.subr.mxu1 %v248_v4  ;;  %v397_v6 = vsel %vm395_vm2, %v247_v3, 0.0  ;;  %v401_v9 = vsel %vm395_vm2, %v248_v4, 0.0 }
  0x1d   : > { %252 = vmatpush1.xpose.msra.mxu0 %v242_v1  ;;  %322 = vmatpush1.xpose.msra.mxu1 %v243_v2  ;;  %v398_v8 = vadd.f32 %v397_v6, %v396_v5 }
  0x1e   : > { %315 = vmatprep.mubr.f32.mxu0 %v247_v3  ;;  %385 = vmatprep.mubr.f32.mxu1 %v248_v4 }
  0x1f   : > { %v400_v10 = vadd.f32 %v399_v7, %v398_v8 }
  0x20   : > { %316 = vmatmul.mubr.f32.vlgmr.msra.gmra.mrb[0].mxu0 %v242_v1  ;;  %386 = vmatmul.mubr.f32.vlgmr.msra.gmra.mrb[0].mxu1 %v243_v2 }
  0x21   : > { %v402_v11 = vadd.f32 %v401_v9, %v400_v10  ;;  %v244_v16 = vld [vmem:[%s700_s30] sm:$0xf] }
  0x22   : > { %v394_v12 = vld [vmem:[%s228_s5] sm:$0xf] }
  0x23   : > { %403 = vadd.xlane.f32.xlu0 %v402_v11 }
  0xb0   : > { %v404_v13 = vpop.xlane.xlu0 %403 }
  0xb1   : > { %v405_v14 = vadd.f32 %v404_v13, %v394_v12 }
  0xb3   : > { %407 = vst.msk [vmem:[%s228_s5] sm:$0xf] %vm236_vm1, %v405_v14 }
  0xf3   : > { %v317_v15 = vpop.f32.mrb[0].mxu0  ;;  %v387_v17 = vpop.f32.mrb[0].mxu1 }
  0xf4   : > { %v388_v18 = vadd.f32 %v387_v17, %v317_v15  ;;  %v319_v19 = vpop.f32.mrb[1].mxu0  ;;  %v389_v20 = vpop.f32.mrb[1].mxu1 }
  0xf6   : > { %v391_v21 = vadd.f32 %v388_v18, %v244_v16 }
  0xf8   : > { %393 = vst.msk [vmem:[%s700_s30] sm:$0xf] %vm234_vm0, %v391_v21 }
  0xf9 PF: > { %s13_s13 = sadd.s32 1, %s640_s13   ;;  %s731_s9 = smov %s632_s11 }
  0xfa   : > { %p10_p10 = scmp.ge.s32.totalorder %s13_s13, 6   ;;  %s732_s10 = smov %s636_s12 }
  0xfb   : > { %s733_s11 = smov %s736_s14  ;;  %s734_s12 = smov %s740_s15 }
  0xfc   :  { %12 = sbr.rel (!%p10_p10) target bundleno = 3 (0x3), region = 74 }

// kernel: latent_code_upsample.3
= control target key start
LH: loop header
LB: loop body
LE: loop exit
PB: predicated region body
PF: predicated region fallthrough
CT: control target
= control target key end

     0   :  { %s664_s12 = smov 0   ;;  %s666_s13 = smov 0   ;;  %s751_s0 = inlined_call_operand.vmem [shape: f32[2,4,512], index: 0, kind: input, shape index: {}]   ;;  %s752_s1 = inlined_call_operand.vmem [shape: f32[32,4], index: 1, kind: input, shape index: {}]   ;;  %s753_s2 = inlined_call_operand.vmem [shape: f32[32,1], index: 2, kind: input, shape index: {}]   ;;  %s754_s3 = inlined_call_operand.vmem [shape: f32[2,32,512], index: 3, kind: output, shape index: {}]  }
   0x1   :  { %s668_s14 = smov 0  }
   0x2 LB: > { %s25_s15 = sadd.s32 1, %s636_s13  ;;  %p567_p0 = scmp.ge.s32.totalorder %s640_s14, 1  ;;  %s640_s14 = sphi %s668_s14, %s13_s14   ;;  %s636_s13 = sphi %s666_s13, %s756_s13   ;;  %s632_s12 = sphi %s664_s12, %s755_s12  }
   0x3   : > { %p27_p1 = scmp.ge.s32.totalorder %s25_s15, 2  ;;  %p158_p2 = scmp.lt.s32.totalorder %s640_s14, 3 }
   0x5   : > { %s758_s15 = smov (%p27_p1, %s25_s15), 0  ;;  %p159_p3 = pnand %p567_p0, %p158_p2 }
   0x6   : > { %p191_p4 = scmp.lt.s32.totalorder (!%p159_p3), %s632_s12, 1  ;;  %v642_v0 = vmov (!%p159_p3), 0.0   ;;  %v216_v1 = vld [vmem:[%s753_s2] sm:$0xff] (!%p159_p3)  ;;  %v643_v2 = vmov (!%p159_p3), 0   ;;  %v218_v3 = vld [vmem:[%s753_s2 + $0x10] sm:$0xff] (!%p159_p3)  ;;  %v217_v4 = vld [vmem:[%s753_s2 + $0x8] sm:$0xff] (!%p159_p3) }
   0x7   : > { %162 = sbr.rel (%p159_p3) target bundleno = 252 (0xfc), region = 32  ;;  %330 = vmatprep.mubr.f32.mxu0 (!%p159_p3), %v642_v0  ;;  %419 = vmatprep.mubr.f32.mxu1 (!%p159_p3), %v642_v0  ;;  %v219_v5 = vld [vmem:[%s753_s2 + $0x18] sm:$0xff] (!%p159_p3)  ;;  %vm257_vm0 = vcmask (!%p159_p3), 1043456   ;;  %v210_v10 = vld [vmem:[%s752_s1] sm:$0xff] (!%p159_p3)  ;;  %vm244_vm1 = vcmask (!%p159_p3), 31744   ;;  %v211_v11 = vld [vmem:[%s752_s1 + $0x8] sm:$0xff] (!%p159_p3) }
   0x8   : > { %614 = vset.pattern.permute.xlu0 (!%p159_p3), %v643_v2  ;;  %615 = vset.pattern.permute.xlu1 (!%p159_p3), %v643_v2  ;;  %v212_v12 = vld [vmem:[%s752_s1 + $0x10] sm:$0xff] (!%p159_p3)  ;;  %v213_v13 = vld [vmem:[%s752_s1 + $0x18] sm:$0xff] (!%p159_p3) }
   0x9   : > { %222 = vperm.xlu0 (!%p159_p3), %614, %v216_v1   ;;  %232 = vperm.xlu1 (!%p159_p3), %615, %v218_v3  }
   0xd   : > { %227 = vperm.xlu0 (!%p159_p3), %614, %v217_v4   ;;  %237 = vperm.xlu1 (!%p159_p3), %615, %v219_v5  }
   0xe   : > { %s760_s12 = smov (!%p191_p4, %s632_s12), 1 }
   0xf   : > { %s586_s20 = sshll.u32 %s760_s12, 4  ;;  %s587_s9 = sshll.u32 %s760_s12, 7 }
  0x10   : > { %s198_s27 = scalar_lea.vmem %s751_s0, %s586_s20  ;;  %s724_s16 = scalar_lea.vmem %s754_s3, %s587_s9 }
  0x11   : > { %v214_v6 = vld [vmem:[%s198_s27] sm:$0xff]  ;;  %v215_v7 = vld [vmem:[%s198_s27 + $0x8] sm:$0xff] }
  0x12   : > { %v242_v8 = vcombine.high %v214_v6, %v214_v6  ;;  %v243_v9 = vcombine.high %v215_v7, %v215_v7 }
  0x14   : > { %572 = vmatprep.subr.msk.mxu0 %vm257_vm0, %v242_v8  ;;  %578 = vmatprep.subr.msk.mxu1 %vm257_vm0, %v243_v9 }
  0x15   : > { %573 = vmatpush1.msk.msra.mxu0 %vm257_vm0, %v214_v6  ;;  %579 = vmatpush1.msk.msra.mxu1 %vm257_vm0, %v215_v7 }
  0x16   : > { %574 = vmatmul.mubr.msk.f32.vlgmr.msra.gmra.mrb[0].mxu0 %vm244_vm1, %v210_v10  ;;  %580 = vmatmul.mubr.msk.f32.vlgmr.msra.gmra.mrb[0].mxu1 %vm244_vm1, %v210_v10 }
  0x17   : > { %336 = vmatprep.mubr.f32.mxu0 %v642_v0  ;;  %425 = vmatprep.mubr.f32.mxu1 %v642_v0 }
  0x1a   : > { %575 = vmatmul.mubr.msk.f32.gmra.mrb[2].mxu0 %vm244_vm1, %v211_v11  ;;  %581 = vmatmul.mubr.msk.f32.gmra.mrb[2].mxu1 %vm244_vm1, %v211_v11 }
  0x1b   : > { %342 = vmatprep.mubr.f32.mxu0 %v642_v0  ;;  %431 = vmatprep.mubr.f32.mxu1 %v642_v0 }
  0x1e   : > { %576 = vmatmul.mubr.msk.f32.gmra.mrb[4].mxu0 %vm244_vm1, %v212_v12  ;;  %582 = vmatmul.mubr.msk.f32.gmra.mrb[4].mxu1 %vm244_vm1, %v212_v12 }
  0x1f   : > { %348 = vmatprep.mubr.f32.mxu0 %v642_v0  ;;  %437 = vmatprep.mubr.f32.mxu1 %v642_v0 }
  0x22   : > { %577 = vmatmul.mubr.msk.f32.gmra.mrb[6].mxu0 %vm244_vm1, %v213_v13  ;;  %583 = vmatmul.mubr.msk.f32.gmra.mrb[6].mxu1 %vm244_vm1, %v213_v13 }
  0x88   : > { %v223_v14 = vpop.permute.xlu0 %222  ;;  %v233_v26 = vpop.permute.xlu1 %232 }
  0x8c   : > { %v228_v23 = vpop.permute.xlu0 %227  ;;  %v238_v51 = vpop.permute.xlu1 %237 }
  0xe9   : > { %v332_v15 = vpop.f32.mrb[0].mxu0  ;;  %v421_v16 = vpop.f32.mrb[0].mxu1 }
  0xea   : > { %v333_v17 = vadd.f32 %v332_v15, %v223_v14  ;;  %v422_v18 = vadd.f32 %v421_v16, %v223_v14  ;;  %v334_v19 = vpop.f32.mrb[1].mxu0  ;;  %v423_v20 = vpop.f32.mrb[1].mxu1 }
  0xeb   : > { %v335_v21 = vadd.f32 %v334_v19, %v223_v14  ;;  %v424_v22 = vadd.f32 %v423_v20, %v223_v14 }
  0xec   : > { %v444_v24 = vmax.f32 %v333_v17, 0.0  ;;  %v446_v25 = vmax.f32 %v422_v18, 0.0 }
  0xed   : > { %v445_v27 = vmax.f32 %v335_v21, 0.0  ;;  %v447_v28 = vmax.f32 %v424_v22, 0.0  ;;  %v338_v29 = vpop.f32.mrb[2].mxu0  ;;  %v427_v30 = vpop.f32.mrb[2].mxu1 }
  0xee   : > { %460 = vst [vmem:[%s724_s16] sm:$0xff] %v444_v24  ;;  %462 = vst [vmem:[%s724_s16 + $0x10] sm:$0xff] %v446_v25  ;;  %v339_v31 = vadd.f32 %v338_v29, %v228_v23  ;;  %v428_v32 = vadd.f32 %v427_v30, %v228_v23  ;;  %v340_v33 = vpop.f32.mrb[3].mxu0  ;;  %v429_v34 = vpop.f32.mrb[3].mxu1 }
  0xef   : > { %461 = vst [vmem:[%s724_s16 + $0x8] sm:$0xff] %v445_v27  ;;  %463 = vst [vmem:[%s724_s16 + $0x18] sm:$0xff] %v447_v28  ;;  %v341_v35 = vadd.f32 %v340_v33, %v228_v23  ;;  %v430_v36 = vadd.f32 %v429_v34, %v228_v23 }
  0xf0   : > { %v448_v37 = vmax.f32 %v339_v31, 0.0  ;;  %v450_v38 = vmax.f32 %v428_v32, 0.0 }
  0xf1   : > { %v449_v39 = vmax.f32 %v341_v35, 0.0  ;;  %v451_v40 = vmax.f32 %v430_v36, 0.0  ;;  %v344_v41 = vpop.f32.mrb[4].mxu0  ;;  %v433_v42 = vpop.f32.mrb[4].mxu1 }
  0xf2   : > { %464 = vst [vmem:[%s724_s16 + $0x20] sm:$0xff] %v448_v37  ;;  %466 = vst [vmem:[%s724_s16 + $0x30] sm:$0xff] %v450_v38  ;;  %v345_v43 = vadd.f32 %v344_v41, %v233_v26  ;;  %v434_v44 = vadd.f32 %v433_v42, %v233_v26  ;;  %v346_v45 = vpop.f32.mrb[5].mxu0  ;;  %v435_v46 = vpop.f32.mrb[5].mxu1 }
  0xf3   : > { %465 = vst [vmem:[%s724_s16 + $0x28] sm:$0xff] %v449_v39  ;;  %467 = vst [vmem:[%s724_s16 + $0x38] sm:$0xff] %v451_v40  ;;  %v347_v47 = vadd.f32 %v346_v45, %v233_v26  ;;  %v436_v48 = vadd.f32 %v435_v46, %v233_v26 }
  0xf4   : > { %v452_v49 = vmax.f32 %v345_v43, 0.0  ;;  %v454_v50 = vmax.f32 %v434_v44, 0.0 }
  0xf5   : > { %v453_v52 = vmax.f32 %v347_v47, 0.0  ;;  %v455_v53 = vmax.f32 %v436_v48, 0.0  ;;  %v350_v54 = vpop.f32.mrb[6].mxu0  ;;  %v439_v55 = vpop.f32.mrb[6].mxu1 }
  0xf6   : > { %468 = vst [vmem:[%s724_s16 + $0x40] sm:$0xff] %v452_v49  ;;  %470 = vst [vmem:[%s724_s16 + $0x50] sm:$0xff] %v454_v50  ;;  %v351_v56 = vadd.f32 %v350_v54, %v238_v51  ;;  %v440_v57 = vadd.f32 %v439_v55, %v238_v51  ;;  %v352_v58 = vpop.f32.mrb[7].mxu0  ;;  %v441_v59 = vpop.f32.mrb[7].mxu1 }
  0xf7   : > { %469 = vst [vmem:[%s724_s16 + $0x48] sm:$0xff] %v453_v52  ;;  %471 = vst [vmem:[%s724_s16 + $0x58] sm:$0xff] %v455_v53  ;;  %v353_v60 = vadd.f32 %v352_v58, %v238_v51  ;;  %v442_v61 = vadd.f32 %v441_v59, %v238_v51 }
  0xf8   : > { %v456_v62 = vmax.f32 %v351_v56, 0.0  ;;  %v458_v63 = vmax.f32 %v440_v57, 0.0 }
  0xf9   : > { %v457_v0 = vmax.f32 %v353_v60, 0.0  ;;  %v459_v1 = vmax.f32 %v442_v61, 0.0 }
  0xfa   : > { %472 = vst [vmem:[%s724_s16 + $0x60] sm:$0xff] %v456_v62  ;;  %474 = vst [vmem:[%s724_s16 + $0x70] sm:$0xff] %v458_v63 }
  0xfb   : > { %473 = vst [vmem:[%s724_s16 + $0x68] sm:$0xff] %v457_v0  ;;  %475 = vst [vmem:[%s724_s16 + $0x78] sm:$0xff] %v459_v1 }
  0xfc PF: > { %s13_s14 = sadd.s32 1, %s640_s14   ;;  %s755_s12 = smov %s636_s13 }
  0xfd   : > { %p10_p5 = scmp.ge.s32.totalorder %s13_s14, 4   ;;  %s756_s13 = smov %s758_s15 }
  0xff   :  { %12 = sbr.rel (!%p10_p5) target bundleno = 2 (0x2), region = 62 }

</bundles_post_ra>
